<compile_context>
chip_gen: v6e
topology: v6e:2x2x1
jax: 0.10.0
libtpu: 0.0.40
codegen_flags: <defaults>
</compile_context>

<pallas_src>
import math

import jax
import jax.numpy as jnp
from jax.experimental import pallas as pl
from jax.experimental.pallas import tpu as pltpu


def _round_up(x, m):
    return (x + m - 1) // m * m


# ----------------------------------------------------------------------------
# Fused decoder kernel: one grid step == one LSTM layer at this timestep.
# ----------------------------------------------------------------------------
def _fused_decoder_kernel(x_emb_ref, w_ref, b_ref, h_in_ref, c_in_ref,
                          h_out_ref, c_out_ref, xh_scratch, gates_scratch):
    Bp, kin_plus_hp = xh_scratch.shape
    Hp = h_in_ref.shape[2]
    Kin = kin_plus_hp - Hp
    layer = pl.program_id(0)

    # Layer 0: the embedded token (gathered outside the kernel, already padded
    # to (Bp, Kin)) becomes the layer input.  Columns [Hp:Kin] are NOT
    # re-zeroed for layers > 0 — weight rows [H:Kin] are exact zeros there
    # (init_params packing), so stale layer-0 columns contribute 0.
    @pl.when(layer == 0)
    def _():
        xh_scratch[:, :Kin] = x_emb_ref[...].astype(xh_scratch.dtype)

    # h part of the fused [x | h] operand (f32 state -> bf16 matmul input).
    xh_scratch[:, Kin:] = h_in_ref[0].astype(xh_scratch.dtype)

    # Single fused matmul: [x | h] @ [[W_ih],[W_hh]] + (b_ih + b_hh).
    # bf16 x bf16 -> f32 accumulation on the MXU.
    gates_scratch[...] = (
        jnp.dot(xh_scratch[...], w_ref[0], preferred_element_type=jnp.float32)
        + b_ref[0])

    # Elementwise cell update, chunked over lane columns so live vregs stay
    # bounded at large Hp (each gate block is lane-aligned: width Hp).
    chunk = Hp
    for cand in (512, 256, 128):
        if Hp % cand == 0:
            chunk = cand
            break

    def _gate_chunk(ci, carry):
        s = pl.multiple_of(ci * chunk, 128)
        i_g = jax.nn.sigmoid(gates_scratch[:, pl.ds(pl.multiple_of(0 * Hp + s, 128), chunk)])
        f_g = jax.nn.sigmoid(gates_scratch[:, pl.ds(pl.multiple_of(1 * Hp + s, 128), chunk)])
        g_g = jnp.tanh(gates_scratch[:, pl.ds(pl.multiple_of(2 * Hp + s, 128), chunk)])
        o_g = jax.nn.sigmoid(gates_scratch[:, pl.ds(pl.multiple_of(3 * Hp + s, 128), chunk)])
        c_new = f_g * c_in_ref[0, :, pl.ds(s, chunk)] + i_g * g_g
        h_new = o_g * jnp.tanh(c_new)
        c_out_ref[0, :, pl.ds(s, chunk)] = c_new
        h_out_ref[0, :, pl.ds(s, chunk)] = h_new
        # Next layer's input x = this layer's h (dropout=0 / eval mode).
        xh_scratch[:, pl.ds(s, chunk)] = h_new.astype(xh_scratch.dtype)
        return carry

    jax.lax.fori_loop(0, Hp // chunk, _gate_chunk, 0, unroll=True)


# ----------------------------------------------------------------------------
# Parameter init (mimics nn.Embedding / nn.LSTM shapes & init ranges) and
# packing into the fused, padded, lane-aligned layout the kernel expects.
# ----------------------------------------------------------------------------
def init_params(key, vocab_size, emb_dim, hidden_size, num_layers):
    V, E, H, L = vocab_size, emb_dim, hidden_size, num_layers
    Hp = _round_up(H, 128)
    Kin = max(_round_up(E, 128), Hp)   # layer-input width; must hold h for layers > 0

    key, k_emb = jax.random.split(key)
    emb = jax.random.normal(k_emb, (V, E), dtype=jnp.float32)   # nn.Embedding: N(0,1)
    # Row-padded table for the wrapper-side jnp.take gather (no resident
    # padded-vocab table inside the kernel).
    emb_rows = jnp.zeros((V, Kin), jnp.float32).at[:, :E].set(emb)

    bound = 1.0 / math.sqrt(H)
    w_packed = jnp.zeros((L, Kin + Hp, 4 * Hp), jnp.float32)
    b_packed = jnp.zeros((L, 1, 4 * Hp), jnp.float32)
    raw_layers = []
    for layer in range(L):
        in_size = E if layer == 0 else H
        key, k1, k2, k3, k4 = jax.random.split(key, 5)
        # Stored transposed w.r.t. PyTorch: (in, 4H) / (H, 4H).
        w_ih = jax.random.uniform(k1, (in_size, 4 * H), minval=-bound,
                                  maxval=bound, dtype=jnp.float32)
        w_hh = jax.random.uniform(k2, (H, 4 * H), minval=-bound,
                                  maxval=bound, dtype=jnp.float32)
        b_ih = jax.random.uniform(k3, (4 * H,), minval=-bound,
                                  maxval=bound, dtype=jnp.float32)
        b_hh = jax.random.uniform(k4, (4 * H,), minval=-bound,
                                  maxval=bound, dtype=jnp.float32)
        bias = b_ih + b_hh
        raw_layers.append({"w_ih": w_ih, "w_hh": w_hh, "b": bias})
        # Each PyTorch gate block [i,f,g,o] gets its own lane-aligned Hp-wide
        # column block; x-part rows [0:in_size], h-part rows [Kin:Kin+H].
        # Rows [in_size:Kin] and [Kin+H:Kin+Hp] stay exactly zero — the kernel
        # relies on this to skip zero-filling stale scratch columns.
        for g in range(4):
            w_packed = w_packed.at[layer, :in_size, g * Hp:g * Hp + H].set(
                w_ih[:, g * H:(g + 1) * H])
            w_packed = w_packed.at[layer, Kin:Kin + H, g * Hp:g * Hp + H].set(
                w_hh[:, g * H:(g + 1) * H])
            b_packed = b_packed.at[layer, 0, g * Hp:g * Hp + H].set(
                bias[g * H:(g + 1) * H])

    return {
        "emb_rows": emb_rows,
        "w_packed": w_packed.astype(jnp.bfloat16),   # weight-BW-bound decode
        "b_packed": b_packed,                        # tiny: keep f32
        "emb": emb, "layers": raw_layers,            # raw f32, for the reference
        "meta": {"V": V, "E": E, "H": H, "L": L, "Hp": Hp, "Kin": Kin},
    }


# ----------------------------------------------------------------------------
# Padded-state helpers (state stays (L, Bp, Hp) across the whole decode loop).
# ----------------------------------------------------------------------------
def pad_state(params, hidden, cell):
    meta = params["meta"]
    L, H, Hp = meta["L"], meta["H"], meta["Hp"]
    B = hidden.shape[1]
    Bp = _round_up(max(B, 8), 8)
    h_p = jnp.zeros((L, Bp, Hp), jnp.float32).at[:, :B, :H].set(hidden)
    c_p = jnp.zeros((L, Bp, Hp), jnp.float32).at[:, :B, :H].set(cell)
    return h_p, c_p


def _embed_tokens_padded(params, token_ids, Bp):
    Kin = params["meta"]["Kin"]
    B = token_ids.shape[0]
    x_emb = jnp.take(params["emb_rows"], token_ids.astype(jnp.int32), axis=0)  # (B, Kin)
    return jnp.zeros((Bp, Kin), jnp.float32).at[:B].set(x_emb)


def decode_step_padded(params, token_ids, h_p, c_p):
    """One decode timestep; h_p/c_p stay in the padded (L, Bp, Hp) layout."""
    meta = params["meta"]
    L, Hp, Kin = meta["L"], meta["Hp"], meta["Kin"]
    Bp = h_p.shape[1]
    x_emb_p = _embed_tokens_padded(params, token_ids, Bp)

    grid_spec = pltpu.PrefetchScalarGridSpec(
        num_scalar_prefetch=0,
        grid=(L,),
        in_specs=[
            pl.BlockSpec((Bp, Kin), lambda l: (0, 0)),                 # embedded token
            pl.BlockSpec((1, Kin + Hp, 4 * Hp), lambda l: (l, 0, 0)),  # fused weights (bf16)
            pl.BlockSpec((1, 1, 4 * Hp), lambda l: (l, 0, 0)),         # fused bias (f32)
            pl.BlockSpec((1, Bp, Hp), lambda l: (l, 0, 0)),            # hidden in
            pl.BlockSpec((1, Bp, Hp), lambda l: (l, 0, 0)),            # cell in
        ],
        out_specs=(
            pl.BlockSpec((1, Bp, Hp), lambda l: (l, 0, 0)),            # hidden out
            pl.BlockSpec((1, Bp, Hp), lambda l: (l, 0, 0)),            # cell out
        ),
        scratch_shapes=[
            pltpu.VMEM((Bp, Kin + Hp), jnp.bfloat16),  # persistent [x | h] operand
            pltpu.VMEM((Bp, 4 * Hp), jnp.float32),     # gate pre-activations
        ],
    )

    # Explicit VMEM budget (double-buffered weights are the dominant term).
    w_block_bytes = (Kin + Hp) * 4 * Hp * 2
    state_block_bytes = Bp * Hp * 4
    vmem_needed = (2 * w_block_bytes
                   + 2 * 4 * Hp * 4
                   + 2 * Bp * Kin * 4
                   + 8 * state_block_bytes
                   + Bp * (Kin + Hp) * 2 + Bp * 4 * Hp * 4)
    vmem_bytes = int(min(max(vmem_needed + (8 << 20), 32 << 20), 96 << 20))

    cost = pl.CostEstimate(
        flops=int(2 * Bp * (Kin + Hp) * 4 * Hp * L),
        transcendentals=int(5 * Bp * Hp * L),
        bytes_accessed=int(L * w_block_bytes + L * 4 * Hp * 4
                           + 4 * L * state_block_bytes + Bp * Kin * 4),
    )

    h_out_p, c_out_p = pl.pallas_call(
        _fused_decoder_kernel,
        out_shape=(
            jax.ShapeDtypeStruct((L, Bp, Hp), jnp.float32),
            jax.ShapeDtypeStruct((L, Bp, Hp), jnp.float32),
        ),
        grid_spec=grid_spec,
        compiler_params=pltpu.CompilerParams(
            dimension_semantics=("arbitrary",),       # layers are sequential
            vmem_limit_bytes=vmem_bytes),
        cost_estimate=cost,
        input_output_aliases={3: 0, 4: 1},            # update hidden/cell in place
    )(x_emb_p, params["w_packed"], params["b_packed"], h_p, c_p)

    return h_out_p, c_out_p


# ----------------------------------------------------------------------------
# LSTMDecoder.forward (attention=False default), module-compatible signature.
# ----------------------------------------------------------------------------
def lstm_decoder_forward(params, x, hidden, cell, encoder_outputs=None, t=None):
    """x: (B,) int32; hidden/cell: (L, B, H) f32.
    Returns (outputs (B,1,H), hidden (L,B,H), cell (L,B,H))."""
    del encoder_outputs, t  # unused with attention=False (module default)
    meta = params["meta"]
    H = meta["H"]
    B = x.shape[0]
    h_p, c_p = pad_state(params, hidden, cell)
    h_p, c_p = decode_step_padded(params, x, h_p, c_p)
    hidden_out = h_p[:, :B, :H]
    cell_out = c_p[:, :B, :H]
    outputs = hidden_out[-1][:, None, :]               # (B, 1, H), batch_first
    return outputs, hidden_out, cell_out


# ----------------------------------------------------------------------------
# Pure-JAX f32 reference (mirrors PyTorch nn.LSTM single-step math).
# ----------------------------------------------------------------------------
def _reference_step(params, token_ids, hidden, cell):
    H = params["meta"]["H"]
    L = hidden.shape[0]
    layer_input = jnp.take(params["emb"], token_ids, axis=0)
    new_h, new_c = [], []
    for layer in range(L):
        lp = params["layers"][layer]
        gates = layer_input @ lp["w_ih"] + hidden[layer] @ lp["w_hh"] + lp["b"]
        i_g = jax.nn.sigmoid(gates[:, 0 * H:1 * H])
        f_g = jax.nn.sigmoid(gates[:, 1 * H:2 * H])
        g_g = jnp.tanh(gates[:, 2 * H:3 * H])
        o_g = jax.nn.sigmoid(gates[:, 3 * H:4 * H])
        c_new = f_g * cell[layer] + i_g * g_g
        h_new = o_g * jnp.tanh(c_new)
        new_h.append(h_new)
        new_c.append(c_new)
        layer_input = h_new
    return layer_input, jnp.stack(new_h), jnp.stack(new_c)


# ----------------------------------------------------------------------------
# Demo
# ----------------------------------------------------------------------------
if __name__ == "__main__":
    B = 2            # batch
    V = 50           # vocab_size (config.out_size)
    E = 32           # emb_dim
    H = 32           # hidden_size
    L = 2            # num_layers
    T = 4            # decode steps

    key = jax.random.PRNGKey(0)
    key, k_params, k_x, k_h, k_c = jax.random.split(key, 5)

    params = init_params(k_params, V, E, H, L)
    tokens = jax.random.randint(k_x, (T, B), 0, V, dtype=jnp.int32)
    hidden0 = jax.random.normal(k_h, (L, B, H), dtype=jnp.float32)
    cell0 = jax.random.normal(k_c, (L, B, H), dtype=jnp.float32)

    # Module-compatible single-step call (shape check).
    out1, h1, c1 = lstm_decoder_forward(params, tokens[0], hidden0, cell0,
                                        encoder_outputs=None, t=0)
    jax.block_until_ready((out1, h1, c1))
    assert out1.shape == (B, 1, H)
    assert h1.shape == (L, B, H) and c1.shape == (L, B, H)

    # Padded-state decode loop: pad once, donate the state buffers each step
    # so the pallas-level aliasing really updates hidden/cell in place.
    h_p, c_p = pad_state(params, hidden0, cell0)
    step = jax.jit(lambda ids, h, c: decode_step_padded(params, ids, h, c),
                   donate_argnums=(1, 2))
    kernel_outs = []
    for t in range(T):
        h_p, c_p = step(tokens[t], h_p, c_p)
        kernel_outs.append(h_p[-1, :B, :H])            # decoder output at step t
    jax.block_until_ready((h_p, c_p))
    kernel_hidden = h_p[:, :B, :H]
    kernel_cell = c_p[:, :B, :H]
    kernel_outs = jnp.stack(kernel_outs)                # (T, B, H)

    # f32 reference over the same T steps.
    ref_h, ref_c = hidden0, cell0
    ref_outs = []
    for t in range(T):
        o, ref_h, ref_c = _reference_step(params, tokens[t], ref_h, ref_c)
        ref_outs.append(o)
    ref_outs = jnp.stack(ref_outs)

    max_diff = max(
        float(jnp.max(jnp.abs(kernel_outs - ref_outs))),
        float(jnp.max(jnp.abs(kernel_hidden - ref_h))),
        float(jnp.max(jnp.abs(kernel_cell - ref_c))),
        float(jnp.max(jnp.abs(out1[:, 0, :] - ref_outs[0]))),
    )
    # bf16 weights / bf16 matmul inputs (f32 accumulation): loosened tolerance.
    assert max_diff < 3e-2, f"kernel/reference mismatch: {max_diff}"
    print("KERNEL_OK")
</pallas_src>

<mosaic_0001>
module attributes {stable_mosaic.version = 11 : i64} {
  func.func @_fused_decoder_kernel(%arg0: i32, %arg1: memref<8x128xf32, #tpu.memory_space<vmem>>, %arg2: memref<1x256x512xbf16, #tpu.memory_space<vmem>>, %arg3: memref<1x1x512xf32, #tpu.memory_space<vmem>>, %arg4: memref<1x8x128xf32, #tpu.memory_space<vmem>>, %arg5: memref<1x8x128xf32, #tpu.memory_space<vmem>>, %arg6: memref<1x8x128xf32, #tpu.memory_space<vmem>>, %arg7: memref<1x8x128xf32, #tpu.memory_space<vmem>>, %arg8: memref<8x256xbf16, #tpu.memory_space<vmem>>, %arg9: memref<8x512xf32, #tpu.memory_space<vmem>>) attributes {dimension_semantics = [#tpu.dimension_semantics<arbitrary>], iteration_bounds = array<i64: 2>, scalar_prefetch = 0 : i64, scratch_operands = 2 : i64, tpu.core_type = #tpu.core_type<tc>, window_params = [{pipeline_mode = #tpu.pipeline_mode<synchronous>, transform_indices = @transform_0, window_bounds = array<i64: 8, 128>}, {transform_indices = @transform_1, window_bounds = array<i64: 1, 256, 512>}, {transform_indices = @transform_2, window_bounds = array<i64: 1, 1, 512>}, {transform_indices = @transform_3, window_bounds = array<i64: 1, 8, 128>}, {transform_indices = @transform_4, window_bounds = array<i64: 1, 8, 128>}, {transform_indices = @transform_5, window_bounds = array<i64: 1, 8, 128>}, {transform_indices = @transform_6, window_bounds = array<i64: 1, 8, 128>}]} {
    %c0_i32 = arith.constant 0 : i32
    %0 = arith.cmpi eq, %arg0, %c0_i32 : i32
    %1 = arith.extui %0 : i1 to i32
    %c0_i32_0 = arith.constant 0 : i32
    %2 = arith.cmpi ne, %1, %c0_i32_0 : i32
    scf.if %2 {
      %c0_31 = arith.constant 0 : index
      %c0_32 = arith.constant 0 : index
      %69 = vector.load %arg1[%c0_31, %c0_32] : memref<8x128xf32, #tpu.memory_space<vmem>>, vector<8x128xf32>
      %70 = arith.truncf %69 : vector<8x128xf32> to vector<8x128xbf16>
      %c0_33 = arith.constant 0 : index
      %c0_34 = arith.constant 0 : index
      %71 = vector.load %arg8[%c0_33, %c0_34] : memref<8x256xbf16, #tpu.memory_space<vmem>>, vector<8x128xbf16>
      tpu.vector_store %arg8[%c0_33, %c0_34], %70 {strides = array<i32>} : memref<8x256xbf16, #tpu.memory_space<vmem>>, vector<8x128xbf16>,
    } else {
    }
    %c0 = arith.constant 0 : index
    %c0_1 = arith.constant 0 : index
    %c0_2 = arith.constant 0 : index
    %3 = vector.load %arg4[%c0, %c0_1, %c0_2] : memref<1x8x128xf32, #tpu.memory_space<vmem>>, vector<1x8x128xf32>
    %4 = vector.shape_cast %3 : vector<1x8x128xf32> to vector<8x128xf32>
    %5 = arith.truncf %4 : vector<8x128xf32> to vector<8x128xbf16>
    %c0_3 = arith.constant 0 : index
    %c128 = arith.constant 128 : index
    %6 = vector.load %arg8[%c0_3, %c128] : memref<8x256xbf16, #tpu.memory_space<vmem>>, vector<8x128xbf16>
    tpu.vector_store %arg8[%c0_3, %c128], %5 {strides = array<i32>} : memref<8x256xbf16, #tpu.memory_space<vmem>>, vector<8x128xbf16>,
    %c0_4 = arith.constant 0 : index
    %c0_5 = arith.constant 0 : index
    %7 = vector.load %arg8[%c0_4, %c0_5] : memref<8x256xbf16, #tpu.memory_space<vmem>>, vector<8x256xbf16>
    %c0_6 = arith.constant 0 : index
    %c0_7 = arith.constant 0 : index
    %c0_8 = arith.constant 0 : index
    %8 = vector.load %arg2[%c0_6, %c0_7, %c0_8] : memref<1x256x512xbf16, #tpu.memory_space<vmem>>, vector<1x256x512xbf16>
    %9 = vector.shape_cast %8 : vector<1x256x512xbf16> to vector<256x512xbf16>
    %cst = arith.constant dense<0.000000e+00> : vector<8x512xf32>
    %10 = tpu.matmul %7, %9, %cst {dimension_numbers = #tpu.dot_dimension_numbers<[1], [0], [0], [1], [0, 0, 1, 1], [], []>} : vector<8x256xbf16>, vector<256x512xbf16>, vector<8x512xf32> -> vector<8x512xf32>
    %c0_9 = arith.constant 0 : index
    %c0_10 = arith.constant 0 : index
    %c0_11 = arith.constant 0 : index
    %11 = vector.load %arg3[%c0_9, %c0_10, %c0_11] : memref<1x1x512xf32, #tpu.memory_space<vmem>>, vector<1x1x512xf32>
    %12 = vector.shape_cast %11 : vector<1x1x512xf32> to vector<1x512xf32>
    %13 = vector.broadcast %12 : vector<1x512xf32> to vector<8x512xf32>
    %14 = arith.addf %10, %13 : vector<8x512xf32>
    %c0_12 = arith.constant 0 : index
    %c0_13 = arith.constant 0 : index
    %15 = vector.load %arg9[%c0_12, %c0_13] : memref<8x512xf32, #tpu.memory_space<vmem>>, vector<8x512xf32>
    tpu.vector_store %arg9[%c0_12, %c0_13], %14 {strides = array<i32>} : memref<8x512xf32, #tpu.memory_space<vmem>>, vector<8x512xf32>,
    %c0_i32_14 = arith.constant 0 : i32
    %c128_i32 = arith.constant 128 : i32
    %16 = arith.muli %c0_i32_14, %c128_i32 : i32
    %17 = tpu.assume_multiple %16, 128 : i32
    %c0_i32_15 = arith.constant 0 : i32
    %18 = arith.addi %c0_i32_15, %17 : i32
    %19 = tpu.assume_multiple %18, 128 : i32
    %c0_16 = arith.constant 0 : index
    %20 = arith.index_cast %19 : i32 to index
    %21 = vector.load %arg9[%c0_16, %20] : memref<8x512xf32, #tpu.memory_space<vmem>>, vector<8x128xf32>
    %22 = arith.negf %21 : vector<8x128xf32>
    %23 = math.exp %22 : vector<8x128xf32>
    %cst_17 = arith.constant 1.000000e+00 : f32
    %24 = vector.broadcast %cst_17 : f32 to vector<8x128xf32>
    %25 = arith.addf %24, %23 : vector<8x128xf32>
    %26 = arith.divf %24, %25 : vector<8x128xf32>
    %c128_i32_18 = arith.constant 128 : i32
    %27 = arith.addi %c128_i32_18, %17 : i32
    %28 = tpu.assume_multiple %27, 128 : i32
    %c0_19 = arith.constant 0 : index
    %29 = arith.index_cast %28 : i32 to index
    %30 = vector.load %arg9[%c0_19, %29] : memref<8x512xf32, #tpu.memory_space<vmem>>, vector<8x128xf32>
    %31 = arith.negf %30 : vector<8x128xf32>
    %32 = math.exp %31 : vector<8x128xf32>
    %cst_20 = arith.constant 1.000000e+00 : f32
    %33 = vector.broadcast %cst_20 : f32 to vector<8x128xf32>
    %34 = arith.addf %33, %32 : vector<8x128xf32>
    %35 = arith.divf %33, %34 : vector<8x128xf32>
    %c256_i32 = arith.constant 256 : i32
    %36 = arith.addi %c256_i32, %17 : i32
    %37 = tpu.assume_multiple %36, 128 : i32
    %c0_21 = arith.constant 0 : index
    %38 = arith.index_cast %37 : i32 to index
    %39 = vector.load %arg9[%c0_21, %38] : memref<8x512xf32, #tpu.memory_space<vmem>>, vector<8x128xf32>
    %40 = math.tanh %39 : vector<8x128xf32>
    %c384_i32 = arith.constant 384 : i32
    %41 = arith.addi %c384_i32, %17 : i32
    %42 = tpu.assume_multiple %41, 128 : i32
    %c0_22 = arith.constant 0 : index
    %43 = arith.index_cast %42 : i32 to index
    %44 = vector.load %arg9[%c0_22, %43] : memref<8x512xf32, #tpu.memory_space<vmem>>, vector<8x128xf32>
    %45 = arith.negf %44 : vector<8x128xf32>
    %46 = math.exp %45 : vector<8x128xf32>
    %cst_23 = arith.constant 1.000000e+00 : f32
    %47 = vector.broadcast %cst_23 : f32 to vector<8x128xf32>
    %48 = arith.addf %47, %46 : vector<8x128xf32>
    %49 = arith.divf %47, %48 : vector<8x128xf32>
    %c0_24 = arith.constant 0 : index
    %c0_25 = arith.constant 0 : index
    %50 = arith.index_cast %17 : i32 to index
    %51 = vector.load %arg5[%c0_24, %c0_25, %50] : memref<1x8x128xf32, #tpu.memory_space<vmem>>, vector<1x8x128xf32>
    %52 = vector.shape_cast %51 : vector<1x8x128xf32> to vector<8x128xf32>
    %53 = arith.mulf %35, %52 : vector<8x128xf32>
    %54 = arith.mulf %26, %40 : vector<8x128xf32>
    %55 = arith.addf %53, %54 : vector<8x128xf32>
    %56 = math.tanh %55 : vector<8x128xf32>
    %57 = arith.mulf %49, %56 : vector<8x128xf32>
    %c0_26 = arith.constant 0 : index
    %c0_27 = arith.constant 0 : index
    %58 = arith.index_cast %17 : i32 to index
    %59 = vector.load %arg7[%c0_26, %c0_27, %58] : memref<1x8x128xf32, #tpu.memory_space<vmem>>, vector<1x8x128xf32>
    %60 = vector.shape_cast %59 : vector<1x8x128xf32> to vector<8x128xf32>
    %61 = vector.shape_cast %55 : vector<8x128xf32> to vector<1x8x128xf32>
    tpu.vector_store %arg7[%c0_26, %c0_27, %58], %61 {strides = array<i32>} : memref<1x8x128xf32, #tpu.memory_space<vmem>>, vector<1x8x128xf32>,
    %c0_28 = arith.constant 0 : index
    %c0_29 = arith.constant 0 : index
    %62 = arith.index_cast %17 : i32 to index
    %63 = vector.load %arg6[%c0_28, %c0_29, %62] : memref<1x8x128xf32, #tpu.memory_space<vmem>>, vector<1x8x128xf32>
    %64 = vector.shape_cast %63 : vector<1x8x128xf32> to vector<8x128xf32>
    %65 = vector.shape_cast %57 : vector<8x128xf32> to vector<1x8x128xf32>
    tpu.vector_store %arg6[%c0_28, %c0_29, %62], %65 {strides = array<i32>} : memref<1x8x128xf32, #tpu.memory_space<vmem>>, vector<1x8x128xf32>,
    %66 = arith.truncf %57 : vector<8x128xf32> to vector<8x128xbf16>
    %c0_30 = arith.constant 0 : index
    %67 = arith.index_cast %17 : i32 to index
    %68 = vector.load %arg8[%c0_30, %67] : memref<8x256xbf16, #tpu.memory_space<vmem>>, vector<8x128xbf16>
    tpu.vector_store %arg8[%c0_30, %67], %66 {strides = array<i32>} : memref<8x256xbf16, #tpu.memory_space<vmem>>, vector<8x128xbf16>,
    %c1_i32 = arith.constant 1 : i32
    return
  }
  func.func @transform_0(%arg0: i32) -> (i32, i32) {
    %c0_i32 = arith.constant 0 : i32
    %c0_i32_0 = arith.constant 0 : i32
    %c0_i32_1 = arith.constant 0 : i32
    return %c0_i32, %c0_i32_0 : i32, i32
  }
  func.func @transform_1(%arg0: i32) -> (i32, i32, i32) {
    %c0_i32 = arith.constant 0 : i32
    %c0_i32_0 = arith.constant 0 : i32
    %c0_i32_1 = arith.constant 0 : i32
    return %arg0, %c0_i32, %c0_i32_0 : i32, i32, i32
  }
  func.func @transform_2(%arg0: i32) -> (i32, i32, i32) {
    %c0_i32 = arith.constant 0 : i32
    %c0_i32_0 = arith.constant 0 : i32
    %c0_i32_1 = arith.constant 0 : i32
    return %arg0, %c0_i32, %c0_i32_0 : i32, i32, i32
  }
  func.func @transform_3(%arg0: i32) -> (i32, i32, i32) {
    %c0_i32 = arith.constant 0 : i32
    %c0_i32_0 = arith.constant 0 : i32
    %c0_i32_1 = arith.constant 0 : i32
    return %arg0, %c0_i32, %c0_i32_0 : i32, i32, i32
  }
  func.func @transform_4(%arg0: i32) -> (i32, i32, i32) {
    %c0_i32 = arith.constant 0 : i32
    %c0_i32_0 = arith.constant 0 : i32
    %c0_i32_1 = arith.constant 0 : i32
    return %arg0, %c0_i32, %c0_i32_0 : i32, i32, i32
  }
  func.func @transform_5(%arg0: i32) -> (i32, i32, i32) {
    %c0_i32 = arith.constant 0 : i32
    %c0_i32_0 = arith.constant 0 : i32
    %c0_i32_1 = arith.constant 0 : i32
    return %arg0, %c0_i32, %c0_i32_0 : i32, i32, i32
  }
  func.func @transform_6(%arg0: i32) -> (i32, i32, i32) {
    %c0_i32 = arith.constant 0 : i32
    %c0_i32_0 = arith.constant 0 : i32
    %c0_i32_1 = arith.constant 0 : i32
    return %arg0, %c0_i32, %c0_i32_0 : i32, i32, i32
  }
}

</mosaic_0001>

<bundles_post_ra>
// kernel: tpu_custom_call.1
= control target key start
LH: loop header
LB: loop body
LE: loop exit
PB: predicated region body
PF: predicated region fallthrough
CT: control target
= control target key end

     0   :  { %s1972_s0 = inlined_call_operand.vmem [shape: f32[8,128], index: 0, kind: input, shape index: {}]   ;;  %s1973_s1 = inlined_call_operand.hbm [shape: bf16[2,256,512], index: 1, kind: input, shape index: {}]   ;;  %s1974_s2 = inlined_call_operand.vmem [shape: f32[2,1,512], index: 2, kind: input, shape index: {}]   ;;  %s1975_s3 = inlined_call_operand.hbm [shape: f32[2,8,128], index: 3, kind: input, shape index: {}, may-alias: {3,5}]   ;;  %s1976_s4 = inlined_call_operand.hbm [shape: f32[2,8,128], index: 4, kind: input, shape index: {}, may-alias: {4,6}]   ;;  %s1977_s5 = inlined_call_operand.hbm [shape: f32[2,8,128], index: 5, kind: output, shape index: {0}, may-alias: {3,5}]   ;;  %s1978_s6 = inlined_call_operand.hbm [shape: f32[2,8,128], index: 6, kind: output, shape index: {1}, may-alias: {4,6}]  }
   0x1   :  { %1987 = sst [smem:[#allocation21_spill]] %s1975_s3 }
   0x2   :  { %12 = vsyncpa [#allocation5], 0 }
   0x3   :  { %14 = vsyncpa [#allocation5 + $0x1], 0 }
   0x4   :  { %15 = vsyncpa [#allocation8], 0 }
   0x5   :  { %17 = vsyncpa [#allocation8 + $0x1], 0 }
   0x6   :  { %18 = vsyncpa [#allocation6], 0 }
   0x7   :  { %20 = vsyncpa [#allocation6 + $0x1], 0 }
   0x8   :  { %21 = vsyncpa [#allocation12], 0 }
   0x9   :  { %23 = vsyncpa [#allocation12 + $0x1], 0  ;;  %s1619_s21 = smov 0   ;;  %s1621_s22 = smov 0  }
   0xa   :  { %s1623_s23 = smov 0   ;;  %s1625_s24 = smov 0  }
   0xb LB: > { %1988 = sst [smem:[#allocation17_spill]] %s1571_s23  ;;  %s1640_s25 = sadd.s32 4294967295, %s1575_s24   ;;  %s1575_s24 = sphi %s1625_s24, %s2007_s24   ;;  %s1571_s23 = sphi %s1623_s23, %s2009_s23   ;;  %s1567_s22 = sphi %s1621_s22, %s2011_s22   ;;  %s1563_s21 = sphi %s1619_s21, %s2010_s21  }
   0xc   : > { %1989 = sst [smem:[#allocation18_spill]] %s1575_s24  ;;  %s1122_s26 = sadd.s32 4294967294, %s1575_s24  }
   0xd   : > { %s1644_s27 = sadd.s32 1, %s1575_s24   ;;  %s57_s28 = sadd.s32 1, %s1571_s23 }
   0xe   : > { %1990 = sst [smem:[#allocation19_spill]] %s1644_s27  ;;  %s54_s29 = ssub.s32 %s1575_s24, %s1644_s27 }
   0xf   : > { %p64_p0 = scmp.ne.s32.totalorder %s1571_s23, %s1567_s22  ;;  %p55_p1 = scmp.eq.s32.totalorder %s54_s29, 0 }
  0x10   : > { %p65_p2 = scmp.eq.s32.totalorder %s1575_s24, 0  ;;  %p70_p3 = scmp.ne.s32.totalorder %s1567_s22, %s1563_s21 }
  0x11   : > { %p71_p4 = scmp.eq.s32.totalorder %s1640_s25, 0  ;;  %p172_p7 = scmp.eq.s32.totalorder %s1640_s25, 1 }
  0x12   : > { %s1656_s30 = scalar_select %p55_p1, %s1571_s23, %s57_s28  }
  0x13   : > { %p66_p5 = por %p65_p2, %p64_p0  ;;  %p1658_p6 = por %p71_p4, %p70_p3 }
  0x14   : > { %1991 = sst [smem:[#allocation20_spill]] %s1656_s30  ;;  %p178_p8 = scmp.eq.s32.totalorder %s1122_s26, 1 }
  0x15   : > { %s1992_s7 = scalar_select %p1658_p6, 1, 0 }
  0x16   : > { %p1243_p10 = scmp.lt.s32.totalorder %s1575_s24, 2  ;;  %p1665_p11 = por %p172_p7, %p64_p0 }
  0x17   : > { %p1669_p12 = por %p178_p8, %p70_p3  ;;  %s1674_s10 = sand.u32 1, %s1571_s23  }
  0x18   : > { %s1993_s8 = scalar_select %p1665_p11, 1, 0 }
  0x19   : > { %s1994_s9 = scalar_select %p1669_p12, 1, 0 }
  0x1a   : > { %p1676_p13 = pnand %p1243_p10, %p66_p5  ;;  %s255_s12 = sand.u32 1, %s1575_s24  }
  0x1b   : > { %s1979_s13 = sshll.u32 %s1674_s10, 3  ;;  %s1980_s14 = sshll.u32 %s1575_s24, 7 }
  0x1c   : > { %s1996_s3 = sld [smem:[#allocation21_spill]]  ;;  %s259_s18 = scalar_lea.vmem [#allocation7], %s1979_s13 }
  0x1d   : > { %s266_s19 = sshll.u32 %s259_s18, 4  ;;  %s1692_s20 = scalar_lea.sflag [#allocation8], %s255_s12  ;;  %s267_s19 = int_to_ptr.vmem [resolvable:$true] %s266_s19 }
  0x1e   : > { %p1698_p1 = pneg %p1676_p13 }
  0x22   : > { %s1688_s17 = scalar_lea.hbm %s1996_s3, %s1980_s14  ;;  %s1398_s16 = scalar_lea.hbm %s1996_s3, 256 }
  0x23   : > { %s1393_s26 = scalar_lea.hbm %s1688_s17, 128  ;;  %p1399_p4 = scmp.lt.s32.totalorder %s1688_s17, %s1996_s3 }
  0x24   : > { %p1394_p0 = scmp.ne.s32.totalorder %s1688_s17, %s1393_s26  ;;  %p1400_p5 = scmp.lt.s32.totalorder %s1398_s16, %s1393_s26 }
  0x26   : > { %p1396_p2 = pnand %p1698_p1, %p1394_p0  ;;  %p1401_p7 = por %p1400_p5, %p1399_p4 }
  0x28   : > { %p1397_p3 = pneg %p1396_p2 }
  0x2a   : > { %p1402_p8 = pnand %p1401_p7, %p1397_p3 }
  0x2c   : > { %1405 = shalt.err (!%p1402_p8)
}
  0x2d   : > { %s1406_s12 = scalar_lea.vmem %s267_s19, 128  ;;  %s1577_s14 = smov [#allocation7]  }
  0x2e   : > { %p1407_p10 = scmp.ne.s32.totalorder %s267_s19, %s1406_s12  ;;  %s1411_s30 = sshll.u32 %s1577_s14, 4  ;;  %s1412_s30 = int_to_ptr.vmem [resolvable:$false] %s1411_s30 }
  0x2f   : > { %s1413_s23 = scalar_lea.vmem %s1412_s30, 256  ;;  %p1414_p0 = scmp.lt.s32.totalorder %s267_s19, %s1412_s30 }
  0x30   : > { %p1409_p9 = pnand %p1407_p10, %p1698_p1  ;;  %p1415_p2 = scmp.lt.s32.totalorder %s1413_s23, %s1406_s12 }
  0x32   : > { %p1410_p12 = pneg %p1409_p9  ;;  %p1416_p11 = por %p1415_p2, %p1414_p0 }
  0x34   : > { %p1417_p6 = pnand %p1416_p11, %p1410_p12 }
  0x36   : > { %1420 = shalt.err (!%p1417_p6)
}
  0x37   : > { %1232 = dma.hbm_to_vmem [thread:$0]  (!%p1676_p13), %s1688_s17, 128, %s267_s19, %s1692_s20  }
  0x38   : > { %s1998_s13 = sshll.u32 %s1575_s24, 7  ;;  %p1132_p6 = scmp.ge.s32.totalorder %s1575_s24, 1 }
  0x39   : > { %s1722_s23 = scalar_lea.hbm %s1976_s4, %s1998_s13  ;;  %p289_p9 = scmp.lt.s32.totalorder %s1575_s24, 3 }
  0x3a   : > { %s1125_s30 = sshll.u32 %s1674_s10, 9  ;;  %s1215_s29 = sshll.u32 %s1575_s24, 13 }
  0x3b   : > { %p1728_p11 = pnand %p1132_p6, %p289_p9  ;;  %s1735_s12 = scalar_lea.hbm %s1973_s1, %s1215_s29 }
  0x3c   : > { %s231_s17 = scalar_lea.vmem [#allocation4], %s1125_s30  ;;  %s2000_s13 = sshll.u32 %s1674_s10, 3 }
  0x3d   : > { %s1999_s15 = scalar_select %p1728_p11, 1, 0 }
  0x3e   : > { %s238_s19 = sshll.u32 %s231_s17, 4  ;;  %s1741_s14 = scalar_lea.vmem [#allocation9], %s2000_s13  ;;  %s1737_s19 = int_to_ptr.vmem [resolvable:$true] %s238_s19 }
  0x3f   : > { %s284_s26 = sshll.u32 %s1741_s14, 4  ;;  %s228_s3 = scalar_lea.sflag [#allocation5], %s1674_s10  ;;  %s285_s26 = int_to_ptr.vmem [resolvable:$true] %s284_s26 }
  0x40   : > { %s1421_s27 = scalar_lea.hbm %s1735_s12, 8192  ;;  %s1426_s18 = scalar_lea.hbm %s1973_s1, 16384 }
  0x41   : > { %p1422_p12 = scmp.ne.s32.totalorder %s1735_s12, %s1421_s27  ;;  %p1427_p5 = scmp.lt.s32.totalorder %s1735_s12, %s1973_s1 }
  0x42   : > { %p1428_p7 = scmp.lt.s32.totalorder %s1426_s18, %s1421_s27 }
  0x43   : > { %p1424_p3 = pnand %p1422_p12, %p1698_p1 }
  0x44   : > { %p1429_p8 = por %p1428_p7, %p1427_p5 }
  0x45   : > { %p1425_p4 = pneg %p1424_p3 }
  0x47   : > { %p1430_p10 = pnand %p1429_p8, %p1425_p4 }
  0x49   : > { %1433 = shalt.err (!%p1430_p10)
}
  0x4a   : > { %s1434_s17 = scalar_lea.vmem %s1737_s19, 8192  ;;  %s1578_s13 = smov [#allocation4]  }
  0x4b   : > { %p1435_p0 = scmp.ne.s32.totalorder %s1737_s19, %s1434_s17  ;;  %s1439_s29 = sshll.u32 %s1578_s13, 4  ;;  %s1440_s29 = int_to_ptr.vmem [resolvable:$false] %s1439_s29 }
  0x4c   : > { %s1441_s16 = scalar_lea.vmem %s1440_s29, 16384  ;;  %p1442_p9 = scmp.lt.s32.totalorder %s1737_s19, %s1440_s29 }
  0x4d   : > { %p1437_p2 = pnand %p1435_p0, %p1698_p1  ;;  %p1443_p12 = scmp.lt.s32.totalorder %s1441_s16, %s1434_s17 }
  0x4f   : > { %p1438_p6 = pneg %p1437_p2  ;;  %p1444_p3 = por %p1443_p12, %p1442_p9 }
  0x51   : > { %p1445_p11 = pnand %p1444_p3, %p1438_p6 }
  0x53   : > { %1448 = shalt.err (!%p1445_p11)
}
  0x54   : > { %s1579_s24 = smov 256   ;;  %s1580_s27 = smov 16  }
  0x55   : > { %1229 = dma.hbm_to_vmem [thread:$0]  (!%p1676_p13), %s1735_s12, 8192, %s1737_s19, %s228_s3, %s1579_s24, %s1579_s24, %s1580_s27  }
  0x56   : > { %s1449_s18 = scalar_lea.hbm %s1722_s23, 128  ;;  %s1454_s13 = scalar_lea.hbm %s1976_s4, 256 }
  0x57   : > { %p1450_p4 = scmp.ne.s32.totalorder %s1722_s23, %s1449_s18  ;;  %p1455_p7 = scmp.lt.s32.totalorder %s1722_s23, %s1976_s4 }
  0x58   : > { %p1456_p8 = scmp.lt.s32.totalorder %s1454_s13, %s1449_s18 }
  0x59   : > { %p1452_p11 = pnand %p1450_p4, %p1698_p1 }
  0x5a   : > { %p1457_p10 = por %p1456_p8, %p1455_p7 }
  0x5b   : > { %p1453_p5 = pneg %p1452_p11 }
  0x5d   : > { %p1458_p0 = pnand %p1457_p10, %p1453_p5 }
  0x5f   : > { %1461 = shalt.err (!%p1458_p0)
}
  0x60   : > { %s1462_s3 = scalar_lea.vmem %s285_s26, 128  ;;  %s1581_s10 = smov [#allocation9]  }
  0x61   : > { %p1463_p2 = scmp.ne.s32.totalorder %s285_s26, %s1462_s3  ;;  %s1467_s12 = sshll.u32 %s1581_s10, 4  ;;  %s1468_s12 = int_to_ptr.vmem [resolvable:$false] %s1467_s12 }
  0x62   : > { %s1469_s19 = scalar_lea.vmem %s1468_s12, 256  ;;  %p1470_p12 = scmp.lt.s32.totalorder %s285_s26, %s1468_s12 }
  0x63   : > { %p1465_p6 = pnand %p1463_p2, %p1698_p1  ;;  %p1471_p3 = scmp.lt.s32.totalorder %s1469_s19, %s1462_s3 }
  0x65   : > { %p1466_p9 = pneg %p1465_p6  ;;  %p1472_p4 = por %p1471_p3, %p1470_p12 }
  0x67   : > { %p1473_p11 = pnand %p1472_p4, %p1466_p9 }
  0x69   : > { %1476 = shalt.err (!%p1473_p11)
}
  0x6a   : > { %1235 = dma.hbm_to_vmem [thread:$0]  (!%p1676_p13), %s1722_s23, 128, %s285_s26, %s1692_s20  }
  0x6b   : > { %p2001_p5 = scmp.ne.s32.totalorder %s1999_s15, 0 }
  0x6c   : > { %s1789_s28 = sand.u32 (!%p2001_p5), 1, %s1567_s22   ;;  %p2002_p1 = scmp.ne.s32.totalorder (!%p2001_p5), %s1992_s7, 0 }
  0x6d   : > { %293 = sbr.rel (%p2001_p5) target bundleno = 466 (0x1d2), region = 40  ;;  %s1133_s14 = sshll.u32 (!%p2001_p5), %s1789_s28, 9 }
  0x6e   : > { %s296_s24 = scalar_lea.sflag (!%p2001_p5), [#allocation5], %s1789_s28  ;;  %s1793_s27 = scalar_lea.vmem (!%p2001_p5), [#allocation4], %s1133_s14 }
  0x72   : > { %1546 = dma.done.wait (%p2002_p1), %s296_s24, 8192  }
  0x73   : > { %1548 = vsyncadd (%p2002_p1), %s296_s24, 4294959104  ;;  %s304_s11 = sand.u32 1, %s1640_s25   ;;  %s1801_s20 = sshll.u32 %s1789_s28, 3 }
  0x74   : > { %s305_s23 = scalar_lea.sflag [#allocation8], %s304_s11  ;;  %s308_s15 = scalar_lea.vmem [#allocation7], %s1801_s20 }
  0x75   : > { %1550 = dma.done.wait (%p2002_p1), %s305_s23, 256  }
  0x76   : > { %1552 = vsyncadd (%p2002_p1), %s305_s23, 4294967040  ;;  %p365_p13 = scmp.lt.s32.totalorder %s1640_s25, 1  ;;  %s317_s29 = scalar_lea.vmem [#allocation9], %s1801_s20 }
  0x77   : > { %s357_s16 = scalar_lea.vmem [#allocation10], %s1801_s20  ;;  %s364_s3 = scalar_lea.vmem [#allocation11], %s1801_s20 }
  0x78   : > { %s366_s26 = scalar_select %p365_p13, %s1640_s25, 1 }
  0x79   : > { %p1139_p7 = scmp.ne.s32.totalorder %s1640_s25, 0 }
  0x7a   : > { %s1138_s18 = sshll.u32 %s366_s26, 2 }
  0x7b   : > { %s1813_s13 = scalar_lea.vmem %s1974_s2, %s1138_s18  ;;  %372 = sbr.rel (%p1139_p7) target bundleno = 132 (0x84), region = 56 }
  0x80   : > { %v373_v0 = vld [vmem:[%s1972_s0] sm:$0xff] }
  0x81   : > { %v374_v1 = vpack.c.bf16 %v373_v0, %v373_v0 }
  0x83   : > { %375 = vst [vmem:[#allocation2] sm:$0xf] %v374_v1 }
  0x84 PF: > { %v1279_v2 = vld [vmem:[%s1793_s27 + $0xe4] ss:$16 sps:$4 sm:$0xff]   ;;  %v1281_v3 = vld [vmem:[%s1793_s27 + $0xe0] ss:$16 sps:$4 sm:$0xff]   ;;  %v1290_v7 = vld [vmem:[%s1793_s27 + $0xec] ss:$16 sps:$4 sm:$0xff]  }
  0x85   : > { %793 = vmatprep.subr.bf16.mxu0 %v1279_v2  ;;  %v1282_v4 = vld [vmem:[%s1793_s27 + $0xc4] ss:$16 sps:$4 sm:$0xff]   ;;  %v1284_v5 = vld [vmem:[%s1793_s27 + $0xc0] ss:$16 sps:$4 sm:$0xff]   ;;  %v1293_v8 = vld [vmem:[%s1793_s27 + $0xe8] ss:$16 sps:$4 sm:$0xff]   ;;  %834 = vmatprep.subr.bf16.mxu1 %v1290_v7  ;;  %v446_v7 = vlaneseq }
  0x86   : > { %794 = vmatpush1.bf16.msra.mxu0 %v1281_v3  ;;  %v1285_v6 = vld [vmem:[%s1793_s27 + $0xa4] ss:$16 sps:$4 sm:$0xff]   ;;  %v1287_v9 = vld [vmem:[%s1793_s27 + $0xa0] ss:$16 sps:$4 sm:$0xff]   ;;  %835 = vmatpush1.bf16.msra.mxu1 %v1293_v8  ;;  %v1296_v11 = vld [vmem:[%s1793_s27 + $0xcc] ss:$16 sps:$4 sm:$0xff]  }
  0x87   : > { %795 = vmatprep.subr.bf16.mxu0 %v1282_v4  ;;  %v1288_v10 = vld [vmem:[%s1793_s27 + $0x84] ss:$16 sps:$4 sm:$0xff]   ;;  %v1299_v12 = vld [vmem:[%s1793_s27 + $0xc8] ss:$16 sps:$4 sm:$0xff]   ;;  %836 = vmatprep.subr.bf16.mxu1 %v1296_v11  ;;  %v1292_v13 = vld [vmem:[%s1793_s27 + $0x80] ss:$16 sps:$4 sm:$0xff]  }
  0x88   : > { %v1294_v14 = vld [vmem:[%s1793_s27 + $0x64] ss:$16 sps:$4 sm:$0xff]   ;;  %v1302_v15 = vld [vmem:[%s1793_s27 + $0xac] ss:$16 sps:$4 sm:$0xff]   ;;  %v1305_v16 = vld [vmem:[%s1793_s27 + $0xa8] ss:$16 sps:$4 sm:$0xff]  }
  0x89   : > { %v1308_v17 = vld [vmem:[%s1793_s27 + $0x8c] ss:$16 sps:$4 sm:$0xff]   ;;  %v1298_v18 = vld [vmem:[%s1793_s27 + $0x60] ss:$16 sps:$4 sm:$0xff]   ;;  %v1300_v19 = vld [vmem:[%s1793_s27 + $0x44] ss:$16 sps:$4 sm:$0xff]  }
  0x8a   : > { %796 = vmatpush1.bf16.msra.mxu0 %v1284_v5  ;;  %837 = vmatpush1.bf16.msra.mxu1 %v1299_v12  ;;  %v1311_v20 = vld [vmem:[%s1793_s27 + $0x88] ss:$16 sps:$4 sm:$0xff]   ;;  %v1314_v21 = vld [vmem:[%s1793_s27 + $0x6c] ss:$16 sps:$4 sm:$0xff]   ;;  %v1304_v22 = vld [vmem:[%s1793_s27 + $0x40] ss:$16 sps:$4 sm:$0xff]  }
  0x8b   : > { %797 = vmatprep.subr.bf16.mxu0 %v1285_v6  ;;  %838 = vmatprep.subr.bf16.mxu1 %v1302_v15  ;;  %v1306_v23 = vld [vmem:[%s1793_s27 + $0x24] ss:$16 sps:$4 sm:$0xff]   ;;  %v1317_v24 = vld [vmem:[%s1793_s27 + $0x68] ss:$16 sps:$4 sm:$0xff]   ;;  %v1320_v25 = vld [vmem:[%s1793_s27 + $0x4c] ss:$16 sps:$4 sm:$0xff]  }
  0x8c   : > { %v1310_v26 = vld [vmem:[%s1793_s27 + $0x20] ss:$16 sps:$4 sm:$0xff]   ;;  %v1312_v27 = vld [vmem:[%s1793_s27 + $0x4] ss:$16 sps:$4 sm:$0xff]   ;;  %v1323_v28 = vld [vmem:[%s1793_s27 + $0x48] ss:$16 sps:$4 sm:$0xff]  }
  0x8d   : > { %v1326_v29 = vld [vmem:[%s1793_s27 + $0x2c] ss:$16 sps:$4 sm:$0xff]   ;;  %v1316_v30 = vld [vmem:[%s1793_s27] ss:$16 sps:$4 sm:$0xff]   ;;  %v1318_v31 = vld [vmem:[%s1793_s27 + $0x1e4] ss:$16 sps:$4 sm:$0xff]  }
  0x8e   : > { %798 = vmatpush1.bf16.msra.mxu0 %v1287_v9  ;;  %839 = vmatpush1.bf16.msra.mxu1 %v1305_v16  ;;  %v1329_v32 = vld [vmem:[%s1793_s27 + $0x28] ss:$16 sps:$4 sm:$0xff]   ;;  %v1332_v33 = vld [vmem:[%s1793_s27 + $0xc] ss:$16 sps:$4 sm:$0xff]   ;;  %v1322_v34 = vld [vmem:[%s1793_s27 + $0x1e0] ss:$16 sps:$4 sm:$0xff]  }
  0x8f   : > { %799 = vmatprep.subr.bf16.mxu0 %v1288_v10  ;;  %840 = vmatprep.subr.bf16.mxu1 %v1308_v17  ;;  %v1324_v35 = vld [vmem:[%s1793_s27 + $0x1c4] ss:$16 sps:$4 sm:$0xff]   ;;  %v1335_v36 = vld [vmem:[%s1793_s27 + $0x8] ss:$16 sps:$4 sm:$0xff]   ;;  %v1338_v37 = vld [vmem:[%s1793_s27 + $0x1ec] ss:$16 sps:$4 sm:$0xff]  }
  0x90   : > { %v1328_v38 = vld [vmem:[%s1793_s27 + $0x1c0] ss:$16 sps:$4 sm:$0xff]   ;;  %v1330_v39 = vld [vmem:[%s1793_s27 + $0x1a4] ss:$16 sps:$4 sm:$0xff]   ;;  %v1341_v40 = vld [vmem:[%s1793_s27 + $0x1e8] ss:$16 sps:$4 sm:$0xff]  }
  0x91   : > { %v1344_v41 = vld [vmem:[%s1793_s27 + $0x1cc] ss:$16 sps:$4 sm:$0xff]   ;;  %v1334_v42 = vld [vmem:[%s1793_s27 + $0x1a0] ss:$16 sps:$4 sm:$0xff]   ;;  %v1336_v44 = vld [vmem:[%s1793_s27 + $0x184] ss:$16 sps:$4 sm:$0xff]  }
  0x92   : > { %800 = vmatpush1.bf16.msra.mxu0 %v1292_v13  ;;  %841 = vmatpush1.bf16.msra.mxu1 %v1311_v20  ;;  %v376_v43 = vld [vmem:[%s308_s15] sm:$0xff]  ;;  %v447_v8 = vshrl.u32 %v446_v7, 7  ;;  %v444_v10 = vld [vmem:[%s1813_s13] sm:$0xf]  ;;  %s1211_s12 = sshll.u32 %s1640_s25, 7  ;;  %s959_s19 = sshll.u32 %s364_s3, 4  ;;  %s1901_s19 = int_to_ptr.vmem [resolvable:$true] %s959_s19 }
  0x93   : > { %801 = vmatprep.subr.bf16.mxu0 %v1294_v14  ;;  %842 = vmatprep.subr.bf16.mxu1 %v1314_v21  ;;  %v377_v45 = vpack.c.bf16 %v376_v43, %v376_v43  ;;  %v1347_v46 = vld [vmem:[%s1793_s27 + $0x1c8] ss:$16 sps:$4 sm:$0xff]   ;;  %v1350_v47 = vld [vmem:[%s1793_s27 + $0x1ac] ss:$16 sps:$4 sm:$0xff]   ;;  %v1340_v48 = vld [vmem:[%s1793_s27 + $0x180] ss:$16 sps:$4 sm:$0xff]  }
  0x94   : > { %v1342_v49 = vld [vmem:[%s1793_s27 + $0x164] ss:$16 sps:$4 sm:$0xff]   ;;  %v1353_v50 = vld [vmem:[%s1793_s27 + $0x1a8] ss:$16 sps:$4 sm:$0xff]   ;;  %v1356_v51 = vld [vmem:[%s1793_s27 + $0x18c] ss:$16 sps:$4 sm:$0xff]  }
  0x95   : > { %378 = vst [vmem:[#allocation2 + $0x4] sm:$0xf] %v377_v45  ;;  %v1346_v52 = vld [vmem:[%s1793_s27 + $0x160] ss:$16 sps:$4 sm:$0xff]   ;;  %v1348_v53 = vld [vmem:[%s1793_s27 + $0x144] ss:$16 sps:$4 sm:$0xff]  }
  0x96   : > { %802 = vmatpush1.bf16.msra.mxu0 %v1298_v18  ;;  %843 = vmatpush1.bf16.msra.mxu1 %v1317_v24  ;;  %v1359_v54 = vld [vmem:[%s1793_s27 + $0x188] ss:$16 sps:$4 sm:$0xff]   ;;  %v1362_v56 = vld [vmem:[%s1793_s27 + $0x16c] ss:$16 sps:$4 sm:$0xff]   ;;  %v1352_v58 = vld [vmem:[%s1793_s27 + $0x140] ss:$16 sps:$4 sm:$0xff]  }
  0x97   : > { %803 = vmatprep.subr.bf16.mxu0 %v1300_v19  ;;  %844 = vmatprep.subr.bf16.mxu1 %v1320_v25  ;;  %v1354_v59 = vld [vmem:[%s1793_s27 + $0x124] ss:$16 sps:$4 sm:$0xff]   ;;  %v1365_v60 = vld [vmem:[%s1793_s27 + $0x168] ss:$16 sps:$4 sm:$0xff]   ;;  %v1368_v61 = vld [vmem:[%s1793_s27 + $0x14c] ss:$16 sps:$4 sm:$0xff]  }
  0x98   : > { %v1358_v62 = vld [vmem:[%s1793_s27 + $0x120] ss:$16 sps:$4 sm:$0xff]   ;;  %v1360_v63 = vld [vmem:[%s1793_s27 + $0x104] ss:$16 sps:$4 sm:$0xff]   ;;  %v1370_v0 = vld [vmem:[%s1793_s27 + $0x148] ss:$16 sps:$4 sm:$0xff]  }
  0x99   : > { %v1371_v1 = vld [vmem:[%s1793_s27 + $0x12c] ss:$16 sps:$4 sm:$0xff]   ;;  %v1364_v2 = vld [vmem:[%s1793_s27 + $0x100] ss:$16 sps:$4 sm:$0xff]   ;;  %v1373_v3 = vld [vmem:[%s1793_s27 + $0x128] ss:$16 sps:$4 sm:$0xff]  }
  0x9a   : > { %804 = vmatpush1.bf16.msra.mxu0 %v1304_v22  ;;  %845 = vmatpush1.bf16.msra.mxu1 %v1323_v28  ;;  %v1374_v4 = vld [vmem:[%s1793_s27 + $0x10c] ss:$16 sps:$4 sm:$0xff]   ;;  %v1376_v6 = vld [vmem:[%s1793_s27 + $0x108] ss:$16 sps:$4 sm:$0xff]   ;;  %v448_v9 = vsub.s32 0, %v447_v8  ;;  %v452_v11 = vsub.s32 1, %v447_v8  ;;  %s1899_s27 = scalar_lea.hbm %s1978_s6, %s1211_s12 }
  0x9b   : > { %805 = vmatprep.subr.bf16.mxu0 %v1306_v23  ;;  %846 = vmatprep.subr.bf16.mxu1 %v1326_v29  ;;  %v460_v20 = vsub.s32 3, %v447_v8  ;;  %v456_v24 = vsub.s32 2, %v447_v8  ;;  %s933_s11 = scalar_lea.sflag [#allocation12], %s1789_s28  ;;  %s1477_s23 = scalar_lea.vmem %s1901_s19, 128 }
  0x9c   : > { %v379_v55 = vld [vmem:[#allocation2] sm:$0xff]  ;;  %v449_v12 = vrot.slane %v444_v10, %v448_v9  ;;  %v453_v13 = vrot.slane %v444_v10, %v452_v11  ;;  %p1478_p8 = scmp.ne.s32.totalorder %s1901_s19, %s1477_s23  ;;  %p2003_p10 = scmp.ne.s32.totalorder %s1993_s8, 0 }
  0x9d   : > { %v1141_v57 = vcombine.high %v379_v55, %v379_v55  ;;  %v1140_v5 = vcombine.low %v379_v55, %v379_v55  ;;  %v457_v28 = vrot.slane %v444_v10, %v456_v24  ;;  %s1582_s15 = smov [#allocation11]  }
  0x9e   : > { %806 = vmatpush1.bf16.msra.mxu0 %v1310_v26  ;;  %847 = vmatpush1.bf16.msra.mxu1 %v1329_v32  ;;  %v461_v26 = vrot.slane %v444_v10, %v460_v20  ;;  %p1479_p0 = pnand %p1478_p8, %p2003_p10  ;;  %s1481_s26 = sshll.u32 %s1582_s15, 4  ;;  %s1482_s26 = int_to_ptr.vmem [resolvable:$false] %s1481_s26 }
  0x9f   : > { %807 = vmatprep.subr.bf16.mxu0 %v1312_v27  ;;  %848 = vmatprep.subr.bf16.mxu1 %v1332_v33  ;;  %s1483_s18 = scalar_lea.vmem %s1482_s26, 256  ;;  %p1484_p6 = scmp.lt.s32.totalorder %s1901_s19, %s1482_s26 }
  0xa0   : > { %825 = vmatprep.mubr.bf16.mxu0 %v1141_v57  ;;  %866 = vmatprep.mubr.bf16.mxu1 %v1141_v57  ;;  %p1480_p2 = pneg %p1479_p0  ;;  %p1485_p9 = scmp.lt.s32.totalorder %s1483_s18, %s1477_s23 }
  0xa2   : > { %808 = vmatpush1.bf16.msra.mxu0 %v1316_v30  ;;  %849 = vmatpush1.bf16.msra.mxu1 %v1335_v36  ;;  %p1486_p12 = por %p1485_p9, %p1484_p6 }
  0xa3   : > { %809 = vmatprep.subr.bf16.mxu0 %v1318_v31  ;;  %850 = vmatprep.subr.bf16.mxu1 %v1338_v37 }
  0xa4   : > { %p1487_p3 = pnand %p1486_p12, %p1480_p2 }
  0xa6   : > { %810 = vmatpush2.bf16.msra.mxu0 %v1322_v34  ;;  %851 = vmatpush2.bf16.msra.mxu1 %v1341_v40  ;;  %v917_v40 = vld [vmem:[%s317_s29] sm:$0xff] }
  0xa7   : > { %811 = vmatprep.subr.bf16.mxu0 %v1324_v35  ;;  %852 = vmatprep.subr.bf16.mxu1 %v1344_v41 }
  0xaa   : > { %812 = vmatpush2.bf16.msra.mxu0 %v1328_v38  ;;  %853 = vmatpush2.bf16.msra.mxu1 %v1347_v46 }
  0xab   : > { %813 = vmatprep.subr.bf16.mxu0 %v1330_v39  ;;  %854 = vmatprep.subr.bf16.mxu1 %v1350_v47 }
  0xae   : > { %814 = vmatpush2.bf16.msra.mxu0 %v1334_v42  ;;  %855 = vmatpush2.bf16.msra.mxu1 %v1353_v50 }
  0xaf   : > { %815 = vmatprep.subr.bf16.mxu0 %v1336_v44  ;;  %856 = vmatprep.subr.bf16.mxu1 %v1356_v51 }
  0xb2   : > { %816 = vmatpush2.bf16.msra.mxu0 %v1340_v48  ;;  %857 = vmatpush2.bf16.msra.mxu1 %v1359_v54 }
  0xb3   : > { %817 = vmatprep.subr.bf16.mxu0 %v1342_v49  ;;  %858 = vmatprep.subr.bf16.mxu1 %v1362_v56 }
  0xb6   : > { %818 = vmatpush2.bf16.msra.mxu0 %v1346_v52  ;;  %859 = vmatpush2.bf16.msra.mxu1 %v1365_v60 }
  0xb7   : > { %819 = vmatprep.subr.bf16.mxu0 %v1348_v53  ;;  %860 = vmatprep.subr.bf16.mxu1 %v1368_v61 }
  0xba   : > { %820 = vmatpush2.bf16.msra.mxu0 %v1352_v58  ;;  %861 = vmatpush2.bf16.msra.mxu1 %v1370_v0 }
  0xbb   : > { %821 = vmatprep.subr.bf16.mxu0 %v1354_v59  ;;  %862 = vmatprep.subr.bf16.mxu1 %v1371_v1 }
  0xbe   : > { %822 = vmatpush2.bf16.msra.mxu0 %v1358_v62  ;;  %863 = vmatpush2.bf16.msra.mxu1 %v1373_v3 }
  0xbf   : > { %823 = vmatprep.subr.bf16.mxu0 %v1360_v63  ;;  %864 = vmatprep.subr.bf16.mxu1 %v1374_v4 }
  0xc2   : > { %824 = vmatpush2.bf16.msra.mxu0 %v1364_v2  ;;  %865 = vmatpush2.bf16.msra.mxu1 %v1376_v6 }
  0xc5   : > { %826 = vmatmul.mubr.bf16.vlgmr.msra.gmra.mxu0 %v1140_v5  ;;  %867 = vmatmul.mubr.bf16.vlgmr.msra.gmra.mxu1 %v1140_v5 }
 0x185   : > { %v827_v14 = vpop.f32.mrf.mxu0  ;;  %v868_v22 = vpop.f32.mrf.mxu1 }
 0x186   : > { %v828_v15 = vadd.f32 %v827_v14, %v449_v12  ;;  %v869_v31 = vadd.f32 %v868_v22, %v457_v28 }
 0x187   : > { %v829_v16 = vpop.f32.mrf.mxu0  ;;  %v870_v25 = vpop.f32.mrf.mxu1 }
 0x188   : > { %v1206_v17 = vmul.f32 -1.442695, %v828_v15  ;;  %v830_v18 = vadd.f32 %v829_v16, %v453_v13  ;;  %v871_v30 = vadd.f32 %v870_v25, %v461_v26 }
 0x189   : > { %v831_v19 = vpop.f32.mrf.mxu0  ;;  %v872_v27 = vpop.f32.mrf.mxu1 }
 0x18a   : > { %1377 = vpow2.f32 %v1206_v17  ;;  %v1207_v21 = vmul.f32 -1.442695, %v830_v18  ;;  %v1208_v32 = vmul.f32 -1.442695, %v871_v30 }
 0x18b   : > { %v832_v23 = vpop.f32.mrf.mxu0  ;;  %v873_v29 = vpop.f32.mrf.mxu1 }
 0x18c   : > { %1379 = vpow2.f32 %v1207_v21 }
 0x18d   : > { %1381 = vtanh.f32 %v869_v31 }
 0x18e   : > { %1383 = vpow2.f32 %v1208_v32 }
 0x197   : > { %v1378_v33 = vpop.eup %1377 }
 0x198   : > { %v883_v34 = vadd.f32 1.0, %v1378_v33 }
 0x199   : > { %v1380_v35 = vpop.eup %1379 }
 0x19a   : > { %1385 = vrcp.f32 %v883_v34  ;;  %v895_v36 = vadd.f32 1.0, %v1380_v35  ;;  %v1382_v37 = vpop.eup %1381 }
 0x19b   : > { %v1384_v38 = vpop.eup %1383 }
 0x19c   : > { %1387 = vrcp.f32 %v895_v36  ;;  %v914_v42 = vadd.f32 1.0, %v1384_v38 }
 0x19e   : > { %1389 = vrcp.f32 %v914_v42 }
 0x1a7   : > { %v1386_v39 = vpop.eup %1385 }
 0x1a8   : > { %v919_v44 = vmul.f32 %v1386_v39, %v1382_v37 }
 0x1a9   : > { %v1388_v41 = vpop.eup %1387 }
 0x1aa   : > { %v918_v43 = vmul.f32 %v1388_v41, %v917_v40 }
 0x1ac   : > { %v920_v45 = vadd.f32 %v919_v44, %v918_v43 }
 0x1ae   : > { %1391 = vtanh.f32 %v920_v45  ;;  %923 = vst [vmem:[%s364_s3] sm:$0xff] %v920_v45 }
 0x1af   : > { %1490 = shalt.err (!%p1487_p3)
}
 0x1b0   : > { %s1491_s30 = scalar_lea.hbm %s1899_s27, 128  ;;  %s1495_s29 = scalar_lea.hbm %s1978_s6, 256 }
 0x1b1   : > { %p1492_p4 = scmp.ne.s32.totalorder %s1899_s27, %s1491_s30  ;;  %p1496_p1 = scmp.lt.s32.totalorder %s1899_s27, %s1978_s6 }
 0x1b2   : > { %p1497_p13 = scmp.lt.s32.totalorder %s1495_s29, %s1491_s30 }
 0x1b3   : > { %p1493_p11 = pnand %p1492_p4, %p2003_p10 }
 0x1b4   : > { %p1498_p7 = por %p1497_p13, %p1496_p1 }
 0x1b5   : > { %p1494_p5 = pneg %p1493_p11 }
 0x1b7   : > { %p1499_p8 = pnand %p1498_p7, %p1494_p5 }
 0x1b9   : > { %1502 = shalt.err (!%p1499_p8)
}
 0x1ba   : > { %1223 = dma.vmem_to_hbm [thread:$0]  (%p2003_p10), %s1901_s19, 128, %s1899_s27, %s933_s11   ;;  %v1390_v46 = vpop.eup %1389 }
 0x1bb   : > { %s946_s10 = sshll.u32 %s357_s16, 4  ;;  %v1392_v47 = vpop.eup %1391  ;;  %s1933_s23 = scalar_lea.hbm %s1977_s5, %s1211_s12  ;;  %s947_s10 = int_to_ptr.vmem [resolvable:$true] %s946_s10 }
 0x1bc   : > { %v922_v48 = vmul.f32 %v1392_v47, %v1390_v46  ;;  %s928_s15 = scalar_lea.sflag [#allocation6], %s1789_s28  ;;  %s1503_s26 = scalar_lea.vmem %s947_s10, 128 }
 0x1bd   : > { %p1504_p0 = scmp.ne.s32.totalorder %s947_s10, %s1503_s26  ;;  %s1583_s19 = smov [#allocation10]  }
 0x1be   : > { %924 = vst [vmem:[%s357_s16] sm:$0xff] %v922_v48  ;;  %v925_v49 = vpack.c.bf16 %v922_v48, %v922_v48  ;;  %s1507_s27 = sshll.u32 %s1583_s19, 4  ;;  %s1508_s27 = int_to_ptr.vmem [resolvable:$false] %s1507_s27 }
 0x1bf   : > { %p1505_p2 = pnand %p1504_p0, %p2003_p10  ;;  %s1509_s11 = scalar_lea.vmem %s1508_s27, 256 }
 0x1c0   : > { %p1510_p9 = scmp.lt.s32.totalorder %s947_s10, %s1508_s27  ;;  %p1511_p12 = scmp.lt.s32.totalorder %s1509_s11, %s1503_s26 }
 0x1c1   : > { %p1506_p6 = pneg %p1505_p2 }
 0x1c2   : > { %p1512_p3 = por %p1511_p12, %p1510_p9 }
 0x1c4   : > { %p1513_p4 = pnand %p1512_p3, %p1506_p6 }
 0x1c6   : > { %1516 = shalt.err (!%p1513_p4)
}
 0x1c7   : > { %s1517_s25 = scalar_lea.hbm %s1933_s23, 128  ;;  %s1521_s16 = scalar_lea.hbm %s1977_s5, 256 }
 0x1c8   : > { %p1518_p11 = scmp.ne.s32.totalorder %s1933_s23, %s1517_s25  ;;  %p1522_p13 = scmp.lt.s32.totalorder %s1933_s23, %s1977_s5 }
 0x1c9   : > { %p1523_p7 = scmp.lt.s32.totalorder %s1521_s16, %s1517_s25 }
 0x1ca   : > { %p1519_p5 = pnand %p1518_p11, %p2003_p10 }
 0x1cb   : > { %p1524_p8 = por %p1523_p7, %p1522_p13 }
 0x1cc   : > { %p1520_p1 = pneg %p1519_p5 }
 0x1ce   : > { %p1525_p0 = pnand %p1524_p8, %p1520_p1 }
 0x1d0   : > { %1528 = shalt.err (!%p1525_p0)
}
 0x1d1   : > { %1222 = dma.vmem_to_hbm [thread:$0]  (%p2003_p10), %s947_s10, 128, %s1933_s23, %s928_s15   ;;  %926 = vst [vmem:[#allocation2] sm:$0xf] %v925_v49 }
 0x1d2 PF: > { %s2004_s30 = sld [smem:[#allocation18_spill]]  ;;  %s971_s17 = sand.u32 1, %s1563_s21  }
 0x1d3   : > { %p2005_p2 = scmp.ne.s32.totalorder %s1994_s9, 0  ;;  %s972_s13 = scalar_lea.sflag [#allocation6], %s971_s17 }
 0x1d8   : > { %p2006_p6 = scmp.ge.s32.totalorder %s2004_s30, 2 }
 0x1da   : > { %p1237_p9 = pnand %p2006_p6, %p2005_p2 }
 0x1dc   : > { %p1238_p12 = pneg %p1237_p9 }
 0x1de   : > { %1554 = dma.done.wait (%p1238_p12), %s972_s13, 128  }
 0x1df   : > { %1556 = vsyncadd (%p1238_p12), %s972_s13, 4294967168  ;;  %s981_s29 = scalar_lea.sflag [#allocation12], %s971_s17 }
 0x1e0   : > { %1558 = dma.done.wait (%p1238_p12), %s981_s29, 128  }
 0x1e1   : > { %1560 = vsyncadd (%p1238_p12), %s981_s29, 4294967168  ;;  %s2007_s24 = sld [smem:[#allocation19_spill]]  ;;  %s2010_s21 = smov %s1567_s22 }
 0x1e2   : > { %s2008_s8 = sld [smem:[#allocation17_spill]] }
 0x1e3   : > { %s2009_s23 = sld [smem:[#allocation20_spill]] }
 0x1e7   : > { %p26_p10 = scmp.ge.s32.totalorder %s2007_s24, 4  }
 0x1e8   : > { %s2011_s22 = smov %s2008_s8 }
 0x1e9   :  { %28 = sbr.rel (!%p26_p10) target bundleno = 11 (0xb), region = 136 }
 0x1ee   :  { %986 = vsyncpa [#allocation5], 1 }
 0x1ef   :  { %988 = vsyncpa [#allocation5 + $0x1], 1 }
 0x1f0   :  { %989 = vsyncpa [#allocation8], 1 }
 0x1f1   :  { %991 = vsyncpa [#allocation8 + $0x1], 1 }
 0x1f2   :  { %992 = vsyncpa [#allocation6], 1 }
 0x1f3   :  { %994 = vsyncpa [#allocation6 + $0x1], 1 }
 0x1f4   :  { %995 = vsyncpa [#allocation12], 1 }
 0x1f5   :  { %997 = vsyncpa [#allocation12 + $0x1], 1 }

</bundles_post_ra>
